<compile_context>
chip_gen: v7x
topology: tpu7x:2x2x1
jax: 0.10.0
libtpu: 0.0.40
codegen_flags: <defaults>
</compile_context>

<pallas_src>
import functools

import jax
import jax.numpy as jnp
from jax.experimental import pallas as pl
from jax.experimental.pallas import tpu as pltpu


def _round_up(x, m):
    return (x + m - 1) // m * m


# ----------------------------------------------------------------------------
# Pallas kernels: K-tiled matmul with f32 VMEM accumulator, fused
#   bias (BN scale pre-folded into weights) (+ residual) (+ ReLU)
# ----------------------------------------------------------------------------
def _matmul_bias_kernel(p_ref, w_ref, b_ref, o_ref, acc_ref, *, relu):
    @pl.when(pl.program_id(2) == 0)
    def _():
        acc_ref[...] = jnp.zeros_like(acc_ref)

    acc_ref[...] += jnp.dot(p_ref[...], w_ref[...],
                            preferred_element_type=jnp.float32)

    @pl.when(pl.program_id(2) == pl.num_programs(2) - 1)
    def _():
        y = acc_ref[...] + b_ref[...]
        if relu:
            y = jnp.maximum(y, 0.0)
        o_ref[...] = y.astype(o_ref.dtype)


def _matmul_bias_res_relu_kernel(p_ref, w_ref, b_ref, r_ref, o_ref, acc_ref):
    @pl.when(pl.program_id(2) == 0)
    def _():
        acc_ref[...] = jnp.zeros_like(acc_ref)

    acc_ref[...] += jnp.dot(p_ref[...], w_ref[...],
                            preferred_element_type=jnp.float32)

    @pl.when(pl.program_id(2) == pl.num_programs(2) - 1)
    def _():
        y = acc_ref[...] + b_ref[...] + r_ref[...].astype(jnp.float32)
        o_ref[...] = jnp.maximum(y, 0.0).astype(o_ref.dtype)


# ----------------------------------------------------------------------------
# Fused matmul wrapper: pads to lane/tile-friendly shapes, picks tiles, calls
# pallas_call, slices the valid region back out.
# ----------------------------------------------------------------------------
def _fused_matmul(patches, w2d, bias, *, relu, residual=None,
                  out_dtype=jnp.bfloat16):
    """[M,K] @ [K,Cout] + bias (+ residual) (+ ReLU); bf16 operands, f32 acc."""
    M, K = patches.shape
    Cout = w2d.shape[1]

    # Lane-dense padding: Cout and K to multiples of 128, M to the row tile.
    Np = _round_up(Cout, 128)
    Kp = _round_up(K, 128)

    tm = min(512, _round_up(M, 8))
    Mp = _round_up(M, tm)
    if Mp // tm < 2 and M >= 16:          # expose >=2 parallel M steps (v7x 2xTC)
        tm = _round_up(M // 2, 8)
        Mp = _round_up(M, tm)

    tn = 256 if Np % 256 == 0 else 128
    tn = min(tn, Np)
    if Kp % 512 == 0:
        tk = 512
    elif Kp % 256 == 0:
        tk = 256
    else:
        tk = 128
    tk = min(tk, Kp)

    p = jnp.pad(patches.astype(jnp.bfloat16), ((0, Mp - M), (0, Kp - K)))
    w = jnp.pad(w2d.astype(jnp.bfloat16), ((0, Kp - K), (0, Np - Cout)))
    b = jnp.pad(bias.astype(jnp.float32), (0, Np - Cout)).reshape(1, Np)

    grid = (Mp // tm, Np // tn, Kp // tk)

    in_specs = [
        pl.BlockSpec((tm, tk), lambda i, j, k: (i, k)),
        pl.BlockSpec((tk, tn), lambda i, j, k: (k, j)),
        pl.BlockSpec((1, tn), lambda i, j, k: (0, j)),
    ]
    args = [p, w, b]

    if residual is not None:
        r = jnp.pad(residual.astype(jnp.bfloat16),
                    ((0, Mp - M), (0, Np - Cout)))
        in_specs.append(pl.BlockSpec((tm, tn), lambda i, j, k: (i, j)))
        args.append(r)
        kernel = _matmul_bias_res_relu_kernel
    else:
        kernel = functools.partial(_matmul_bias_kernel, relu=relu)

    out = pl.pallas_call(
        kernel,
        out_shape=jax.ShapeDtypeStruct((Mp, Np), out_dtype),
        grid=grid,
        in_specs=in_specs,
        out_specs=pl.BlockSpec((tm, tn), lambda i, j, k: (i, j)),
        scratch_shapes=[pltpu.VMEM((tm, tn), jnp.float32)],
        compiler_params=pltpu.CompilerParams(
            dimension_semantics=("parallel", "parallel", "arbitrary")),
    )(*args)
    return out[:M, :Cout]


# ----------------------------------------------------------------------------
# Plain-JAX glue: im2col, weight reshaping, BN folding, one-time param prep
# ----------------------------------------------------------------------------
def _im2col3x3(x_nhwc, stride):
    """x: [N,H,W,C] -> patches [N*Ho*Wo, 9*C], (kh, kw, cin) ordering."""
    N, H, W, C = x_nhwc.shape
    xp = jnp.pad(x_nhwc, ((0, 0), (1, 1), (1, 1), (0, 0)))
    Ho = (H + 2 - 3) // stride + 1
    Wo = (W + 2 - 3) // stride + 1
    cols = []
    for kh in range(3):
        for kw in range(3):
            cols.append(xp[:, kh:kh + Ho * stride:stride,
                           kw:kw + Wo * stride:stride, :])
    patches = jnp.concatenate(cols, axis=-1)              # [N,Ho,Wo,9C]
    return patches.reshape(N * Ho * Wo, 9 * C), (N, Ho, Wo)


def _w3x3_to_2d(w_oihw):
    """[Cout,Cin,3,3] -> [9*Cin, Cout], matching (kh,kw,cin) patch ordering."""
    Cout, Cin, _, _ = w_oihw.shape
    return jnp.transpose(w_oihw, (2, 3, 1, 0)).reshape(9 * Cin, Cout)


def _fold_bn(gamma, beta, mean, var, eps=1e-5):
    scale = gamma / jnp.sqrt(var + eps)
    bias = beta - mean * scale
    return scale, bias


def init_basic_block_params(key, in_dim, out_dim, stride):
    """Deterministic synthetic parameters (BN folded to scale/bias, f32)."""
    k1, k2, k3 = jax.random.split(key, 3)
    w1 = 0.1 * jax.random.normal(k1, (out_dim, in_dim, 3, 3), jnp.float32)
    w2 = 0.1 * jax.random.normal(k2, (out_dim, out_dim, 3, 3), jnp.float32)

    def bn_params(layer_idx):
        c = jnp.arange(out_dim, dtype=jnp.float32)
        gamma = 1.0 + 0.05 * c + 0.01 * layer_idx
        beta = 0.01 * c - 0.02 * layer_idx
        mean = 0.02 * c + 0.01 * layer_idx
        var = 1.0 + 0.10 * c
        return _fold_bn(gamma, beta, mean, var)

    s1, b1 = bn_params(0)
    s2, b2 = bn_params(1)

    params = {"w1": w1, "s1": s1, "b1": b1, "w2": w2, "s2": s2, "b2": b2}
    if not (in_dim == out_dim and stride == 1):
        wd = 0.1 * jax.random.normal(k3, (out_dim, in_dim, 1, 1), jnp.float32)
        sd, bd = bn_params(2)
        params.update({"wd": wd, "sd": sd, "bd": bd})
    return params


def prepare_params(params):
    """One-time kernel-ready conversion (hoisted out of the forward path):
    weights reshaped to 2D with BN scale folded in, stored as bf16; bias f32."""
    prep = {
        "w1": (_w3x3_to_2d(params["w1"]) *
               params["s1"][None, :]).astype(jnp.bfloat16),
        "b1": params["b1"].astype(jnp.float32),
        "w2": (_w3x3_to_2d(params["w2"]) *
               params["s2"][None, :]).astype(jnp.bfloat16),
        "b2": params["b2"].astype(jnp.float32),
    }
    if "wd" in params:
        Cout, Cin = params["wd"].shape[:2]
        wd2 = params["wd"].reshape(Cout, Cin).T            # [Cin, Cout]
        prep["wd"] = (wd2 * params["sd"][None, :]).astype(jnp.bfloat16)
        prep["bd"] = params["bd"].astype(jnp.float32)
    return prep


# ----------------------------------------------------------------------------
# BasicBlock forward (NHWC internally, NCHW at the boundary)
# ----------------------------------------------------------------------------
def basic_block_forward_nhwc(x_nhwc, prep, stride):
    N, H, W, Cin = x_nhwc.shape
    Cout = prep["w1"].shape[1]

    xb = x_nhwc.astype(jnp.bfloat16)

    # subconv_1: conv3x3(stride) + BN + ReLU   (bf16 intermediate)
    p1, (_, Ho, Wo) = _im2col3x3(xb, stride)
    y0 = _fused_matmul(p1, prep["w1"], prep["b1"], relu=True,
                       out_dtype=jnp.bfloat16)
    x0 = y0.reshape(N, Ho, Wo, Cout)

    # residual path (downsample 1x1 conv + BN, or identity)
    if "wd" in prep:
        xs = xb[:, ::stride, ::stride, :].reshape(N * Ho * Wo, Cin)
        res = _fused_matmul(xs, prep["wd"], prep["bd"], relu=False,
                            out_dtype=jnp.bfloat16)
    else:
        res = xb.reshape(N * Ho * Wo, Cin)

    # subconv_2: conv3x3(1) + BN, fused with residual add + ReLU (f32 out)
    p2, _ = _im2col3x3(x0, 1)
    y = _fused_matmul(p2, prep["w2"], prep["b2"], relu=False,
                      residual=res, out_dtype=jnp.float32)
    return y.reshape(N, Ho, Wo, Cout)


def basic_block_forward_nchw(x_nchw, prep, stride):
    x_nhwc = jnp.transpose(x_nchw, (0, 2, 3, 1))
    out = basic_block_forward_nhwc(x_nhwc, prep, stride)
    return jnp.transpose(out, (0, 3, 1, 2))


# ----------------------------------------------------------------------------
# Pure-JAX reference (f32, for correctness check)
# ----------------------------------------------------------------------------
def _ref_conv_bn(x_nhwc, w_oihw, scale, bias, stride, pad):
    y = jax.lax.conv_general_dilated(
        x_nhwc, jnp.transpose(w_oihw, (2, 3, 1, 0)),
        window_strides=(stride, stride), padding=((pad, pad), (pad, pad)),
        dimension_numbers=("NHWC", "HWIO", "NHWC"))
    return y * scale + bias


def reference_basic_block_nhwc(x_nhwc, params, stride):
    x0 = jax.nn.relu(_ref_conv_bn(x_nhwc, params["w1"],
                                  params["s1"], params["b1"], stride, 1))
    x1 = _ref_conv_bn(x0, params["w2"], params["s2"], params["b2"], 1, 1)
    if "wd" in params:
        res = _ref_conv_bn(x_nhwc, params["wd"],
                           params["sd"], params["bd"], stride, 0)
    else:
        res = x_nhwc
    return jax.nn.relu(res + x1)


# ----------------------------------------------------------------------------
if __name__ == "__main__":
    key = jax.random.PRNGKey(0)
    kx, kp = jax.random.split(key)

    N, Cin, H, W = 2, 4, 16, 16
    Cout, stride = 8, 2              # downsample branch exercised

    x_nchw = jax.random.normal(kx, (N, Cin, H, W), jnp.float32)
    params = init_basic_block_params(kp, Cin, Cout, stride)
    prep = prepare_params(params)

    fwd = jax.jit(basic_block_forward_nchw, static_argnums=(2,))
    out = jax.block_until_ready(fwd(x_nchw, prep, stride))
    assert out.shape == (N, Cout, H // stride, W // stride)

    ref = jnp.transpose(
        reference_basic_block_nhwc(jnp.transpose(x_nchw, (0, 2, 3, 1)),
                                   params, stride),
        (0, 3, 1, 2))
    max_err = float(jnp.max(jnp.abs(out - ref)))
    # bf16 operands vs f32 reference -> loosened tolerance.
    assert jnp.allclose(out, ref, atol=5e-2, rtol=5e-2), \
        f"mismatch vs reference (max abs err {max_err:.4f})"

    print("KERNEL_OK")
</pallas_src>

<mosaic_0001>
module attributes {stable_mosaic.version = 11 : i64} {
  func.func @_matmul_bias_kernel(%arg0: i32, %arg1: i32, %arg2: i32, %arg3: memref<64x128xbf16, #tpu.memory_space<vmem>>, %arg4: memref<128x128xbf16, #tpu.memory_space<vmem>>, %arg5: memref<1x128xf32, #tpu.memory_space<vmem>>, %arg6: memref<64x128xbf16, #tpu.memory_space<vmem>>, %arg7: memref<64x128xf32, #tpu.memory_space<vmem>>) attributes {dimension_semantics = [#tpu.dimension_semantics<parallel>, #tpu.dimension_semantics<parallel>, #tpu.dimension_semantics<arbitrary>], iteration_bounds = array<i64: 2, 1, 1>, scalar_prefetch = 0 : i64, scratch_operands = 1 : i64, tpu.core_type = #tpu.core_type<tc>, window_params = [{transform_indices = @transform_0, window_bounds = array<i64: 64, 128>}, {transform_indices = @transform_1, window_bounds = array<i64: 128, 128>}, {transform_indices = @transform_2, window_bounds = array<i64: 1, 128>}, {transform_indices = @transform_3, window_bounds = array<i64: 64, 128>}]} {
    %c0_i32 = arith.constant 0 : i32
    %0 = arith.cmpi eq, %arg2, %c0_i32 : i32
    %1 = arith.extui %0 : i1 to i32
    %c0_i32_0 = arith.constant 0 : i32
    %2 = arith.cmpi ne, %1, %c0_i32_0 : i32
    scf.if %2 {
      %cst_10 = arith.constant 0.000000e+00 : f32
      %12 = vector.broadcast %cst_10 : f32 to vector<64x128xf32>
      %c0_11 = arith.constant 0 : index
      %c0_12 = arith.constant 0 : index
      %13 = vector.load %arg7[%c0_11, %c0_12] : memref<64x128xf32, #tpu.memory_space<vmem>>, vector<64x128xf32>
      tpu.vector_store %arg7[%c0_11, %c0_12], %12 {strides = array<i32>} : memref<64x128xf32, #tpu.memory_space<vmem>>, vector<64x128xf32>,
    } else {
    }
    %c0 = arith.constant 0 : index
    %c0_1 = arith.constant 0 : index
    %3 = vector.load %arg7[%c0, %c0_1] : memref<64x128xf32, #tpu.memory_space<vmem>>, vector<64x128xf32>
    %c0_2 = arith.constant 0 : index
    %c0_3 = arith.constant 0 : index
    %4 = vector.load %arg3[%c0_2, %c0_3] : memref<64x128xbf16, #tpu.memory_space<vmem>>, vector<64x128xbf16>
    %c0_4 = arith.constant 0 : index
    %c0_5 = arith.constant 0 : index
    %5 = vector.load %arg4[%c0_4, %c0_5] : memref<128x128xbf16, #tpu.memory_space<vmem>>, vector<128x128xbf16>
    %cst = arith.constant dense<0.000000e+00> : vector<64x128xf32>
    %6 = tpu.matmul %4, %5, %cst {dimension_numbers = #tpu.dot_dimension_numbers<[1], [0], [0], [1], [0, 0, 1, 1], [], []>} : vector<64x128xbf16>, vector<128x128xbf16>, vector<64x128xf32> -> vector<64x128xf32>
    %7 = arith.addf %3, %6 : vector<64x128xf32>
    %c0_6 = arith.constant 0 : index
    %c0_7 = arith.constant 0 : index
    %8 = vector.load %arg7[%c0_6, %c0_7] : memref<64x128xf32, #tpu.memory_space<vmem>>, vector<64x128xf32>
    tpu.vector_store %arg7[%c0_6, %c0_7], %7 {strides = array<i32>} : memref<64x128xf32, #tpu.memory_space<vmem>>, vector<64x128xf32>,
    %c0_i32_8 = arith.constant 0 : i32
    %9 = arith.cmpi eq, %arg2, %c0_i32_8 : i32
    %10 = arith.extui %9 : i1 to i32
    %c0_i32_9 = arith.constant 0 : i32
    %11 = arith.cmpi ne, %10, %c0_i32_9 : i32
    scf.if %11 {
      %c0_10 = arith.constant 0 : index
      %c0_11 = arith.constant 0 : index
      %12 = vector.load %arg7[%c0_10, %c0_11] : memref<64x128xf32, #tpu.memory_space<vmem>>, vector<64x128xf32>
      %c0_12 = arith.constant 0 : index
      %c0_13 = arith.constant 0 : index
      %13 = vector.load %arg5[%c0_12, %c0_13] : memref<1x128xf32, #tpu.memory_space<vmem>>, vector<1x128xf32>
      %14 = vector.broadcast %13 : vector<1x128xf32> to vector<64x128xf32>
      %15 = arith.addf %12, %14 : vector<64x128xf32>
      %cst_14 = arith.constant 0.000000e+00 : f32
      %16 = vector.broadcast %cst_14 : f32 to vector<64x128xf32>
      %17 = arith.maximumf %15, %16 : vector<64x128xf32>
      %18 = arith.truncf %17 : vector<64x128xf32> to vector<64x128xbf16>
      %c0_15 = arith.constant 0 : index
      %c0_16 = arith.constant 0 : index
      %19 = vector.load %arg6[%c0_15, %c0_16] : memref<64x128xbf16, #tpu.memory_space<vmem>>, vector<64x128xbf16>
      tpu.vector_store %arg6[%c0_15, %c0_16], %18 {strides = array<i32>} : memref<64x128xbf16, #tpu.memory_space<vmem>>, vector<64x128xbf16>,
    } else {
    }
    return
  }
  func.func @transform_0(%arg0: i32, %arg1: i32, %arg2: i32) -> (i32, i32) {
    %c0_i32 = arith.constant 0 : i32
    return %arg0, %arg2 : i32, i32
  }
  func.func @transform_1(%arg0: i32, %arg1: i32, %arg2: i32) -> (i32, i32) {
    %c0_i32 = arith.constant 0 : i32
    return %arg2, %arg1 : i32, i32
  }
  func.func @transform_2(%arg0: i32, %arg1: i32, %arg2: i32) -> (i32, i32) {
    %c0_i32 = arith.constant 0 : i32
    %c0_i32_0 = arith.constant 0 : i32
    return %c0_i32, %arg1 : i32, i32
  }
  func.func @transform_3(%arg0: i32, %arg1: i32, %arg2: i32) -> (i32, i32) {
    %c0_i32 = arith.constant 0 : i32
    return %arg0, %arg1 : i32, i32
  }
}

module attributes {stable_mosaic.version = 11 : i64} {
  func.func @_matmul_bias_kernel(%arg0: i32, %arg1: i32, %arg2: i32, %arg3: memref<64x128xbf16, #tpu.memory_space<vmem>>, %arg4: memref<128x128xbf16, #tpu.memory_space<vmem>>, %arg5: memref<1x128xf32, #tpu.memory_space<vmem>>, %arg6: memref<64x128xbf16, #tpu.memory_space<vmem>>, %arg7: memref<64x128xf32, #tpu.memory_space<vmem>>) attributes {dimension_semantics = [#tpu.dimension_semantics<parallel>, #tpu.dimension_semantics<parallel>, #tpu.dimension_semantics<arbitrary>], iteration_bounds = array<i64: 2, 1, 1>, scalar_prefetch = 0 : i64, scratch_operands = 1 : i64, tpu.core_type = #tpu.core_type<tc>, window_params = [{transform_indices = @transform_0, window_bounds = array<i64: 64, 128>}, {transform_indices = @transform_1, window_bounds = array<i64: 128, 128>}, {transform_indices = @transform_2, window_bounds = array<i64: 1, 128>}, {transform_indices = @transform_3, window_bounds = array<i64: 64, 128>}]} {
    %c0_i32 = arith.constant 0 : i32
    %0 = arith.cmpi eq, %arg2, %c0_i32 : i32
    %1 = arith.extui %0 : i1 to i32
    %c0_i32_0 = arith.constant 0 : i32
    %2 = arith.cmpi ne, %1, %c0_i32_0 : i32
    scf.if %2 {
      %cst_10 = arith.constant 0.000000e+00 : f32
      %12 = vector.broadcast %cst_10 : f32 to vector<64x128xf32>
      %c0_11 = arith.constant 0 : index
      %c0_12 = arith.constant 0 : index
      %13 = vector.load %arg7[%c0_11, %c0_12] : memref<64x128xf32, #tpu.memory_space<vmem>>, vector<64x128xf32>
      tpu.vector_store %arg7[%c0_11, %c0_12], %12 {strides = array<i32>} : memref<64x128xf32, #tpu.memory_space<vmem>>, vector<64x128xf32>,
    } else {
    }
    %c0 = arith.constant 0 : index
    %c0_1 = arith.constant 0 : index
    %3 = vector.load %arg7[%c0, %c0_1] : memref<64x128xf32, #tpu.memory_space<vmem>>, vector<64x128xf32>
    %c0_2 = arith.constant 0 : index
    %c0_3 = arith.constant 0 : index
    %4 = vector.load %arg3[%c0_2, %c0_3] : memref<64x128xbf16, #tpu.memory_space<vmem>>, vector<64x128xbf16>
    %c0_4 = arith.constant 0 : index
    %c0_5 = arith.constant 0 : index
    %5 = vector.load %arg4[%c0_4, %c0_5] : memref<128x128xbf16, #tpu.memory_space<vmem>>, vector<128x128xbf16>
    %cst = arith.constant dense<0.000000e+00> : vector<64x128xf32>
    %6 = tpu.matmul %4, %5, %cst {dimension_numbers = #tpu.dot_dimension_numbers<[1], [0], [0], [1], [0, 0, 1, 1], [], []>} : vector<64x128xbf16>, vector<128x128xbf16>, vector<64x128xf32> -> vector<64x128xf32>
    %7 = arith.addf %3, %6 : vector<64x128xf32>
    %c0_6 = arith.constant 0 : index
    %c0_7 = arith.constant 0 : index
    %8 = vector.load %arg7[%c0_6, %c0_7] : memref<64x128xf32, #tpu.memory_space<vmem>>, vector<64x128xf32>
    tpu.vector_store %arg7[%c0_6, %c0_7], %7 {strides = array<i32>} : memref<64x128xf32, #tpu.memory_space<vmem>>, vector<64x128xf32>,
    %c0_i32_8 = arith.constant 0 : i32
    %9 = arith.cmpi eq, %arg2, %c0_i32_8 : i32
    %10 = arith.extui %9 : i1 to i32
    %c0_i32_9 = arith.constant 0 : i32
    %11 = arith.cmpi ne, %10, %c0_i32_9 : i32
    scf.if %11 {
      %c0_10 = arith.constant 0 : index
      %c0_11 = arith.constant 0 : index
      %12 = vector.load %arg7[%c0_10, %c0_11] : memref<64x128xf32, #tpu.memory_space<vmem>>, vector<64x128xf32>
      %c0_12 = arith.constant 0 : index
      %c0_13 = arith.constant 0 : index
      %13 = vector.load %arg5[%c0_12, %c0_13] : memref<1x128xf32, #tpu.memory_space<vmem>>, vector<1x128xf32>
      %14 = vector.broadcast %13 : vector<1x128xf32> to vector<64x128xf32>
      %15 = arith.addf %12, %14 : vector<64x128xf32>
      %16 = arith.truncf %15 : vector<64x128xf32> to vector<64x128xbf16>
      %c0_14 = arith.constant 0 : index
      %c0_15 = arith.constant 0 : index
      %17 = vector.load %arg6[%c0_14, %c0_15] : memref<64x128xbf16, #tpu.memory_space<vmem>>, vector<64x128xbf16>
      tpu.vector_store %arg6[%c0_14, %c0_15], %16 {strides = array<i32>} : memref<64x128xbf16, #tpu.memory_space<vmem>>, vector<64x128xbf16>,
    } else {
    }
    return
  }
  func.func @transform_0(%arg0: i32, %arg1: i32, %arg2: i32) -> (i32, i32) {
    %c0_i32 = arith.constant 0 : i32
    return %arg0, %arg2 : i32, i32
  }
  func.func @transform_1(%arg0: i32, %arg1: i32, %arg2: i32) -> (i32, i32) {
    %c0_i32 = arith.constant 0 : i32
    return %arg2, %arg1 : i32, i32
  }
  func.func @transform_2(%arg0: i32, %arg1: i32, %arg2: i32) -> (i32, i32) {
    %c0_i32 = arith.constant 0 : i32
    %c0_i32_0 = arith.constant 0 : i32
    return %c0_i32, %arg1 : i32, i32
  }
  func.func @transform_3(%arg0: i32, %arg1: i32, %arg2: i32) -> (i32, i32) {
    %c0_i32 = arith.constant 0 : i32
    return %arg0, %arg1 : i32, i32
  }
}

module attributes {stable_mosaic.version = 11 : i64} {
  func.func @_matmul_bias_res_relu_kernel(%arg0: i32, %arg1: i32, %arg2: i32, %arg3: memref<64x128xbf16, #tpu.memory_space<vmem>>, %arg4: memref<128x128xbf16, #tpu.memory_space<vmem>>, %arg5: memref<1x128xf32, #tpu.memory_space<vmem>>, %arg6: memref<64x128xbf16, #tpu.memory_space<vmem>>, %arg7: memref<64x128xf32, #tpu.memory_space<vmem>>, %arg8: memref<64x128xf32, #tpu.memory_space<vmem>>) attributes {dimension_semantics = [#tpu.dimension_semantics<parallel>, #tpu.dimension_semantics<parallel>, #tpu.dimension_semantics<arbitrary>], iteration_bounds = array<i64: 2, 1, 1>, scalar_prefetch = 0 : i64, scratch_operands = 1 : i64, tpu.core_type = #tpu.core_type<tc>, window_params = [{transform_indices = @transform_0, window_bounds = array<i64: 64, 128>}, {transform_indices = @transform_1, window_bounds = array<i64: 128, 128>}, {transform_indices = @transform_2, window_bounds = array<i64: 1, 128>}, {transform_indices = @transform_3, window_bounds = array<i64: 64, 128>}, {transform_indices = @transform_4, window_bounds = array<i64: 64, 128>}]} {
    %c0_i32 = arith.constant 0 : i32
    %0 = arith.cmpi eq, %arg2, %c0_i32 : i32
    %1 = arith.extui %0 : i1 to i32
    %c0_i32_0 = arith.constant 0 : i32
    %2 = arith.cmpi ne, %1, %c0_i32_0 : i32
    scf.if %2 {
      %cst_10 = arith.constant 0.000000e+00 : f32
      %12 = vector.broadcast %cst_10 : f32 to vector<64x128xf32>
      %c0_11 = arith.constant 0 : index
      %c0_12 = arith.constant 0 : index
      %13 = vector.load %arg8[%c0_11, %c0_12] : memref<64x128xf32, #tpu.memory_space<vmem>>, vector<64x128xf32>
      tpu.vector_store %arg8[%c0_11, %c0_12], %12 {strides = array<i32>} : memref<64x128xf32, #tpu.memory_space<vmem>>, vector<64x128xf32>,
    } else {
    }
    %c0 = arith.constant 0 : index
    %c0_1 = arith.constant 0 : index
    %3 = vector.load %arg8[%c0, %c0_1] : memref<64x128xf32, #tpu.memory_space<vmem>>, vector<64x128xf32>
    %c0_2 = arith.constant 0 : index
    %c0_3 = arith.constant 0 : index
    %4 = vector.load %arg3[%c0_2, %c0_3] : memref<64x128xbf16, #tpu.memory_space<vmem>>, vector<64x128xbf16>
    %c0_4 = arith.constant 0 : index
    %c0_5 = arith.constant 0 : index
    %5 = vector.load %arg4[%c0_4, %c0_5] : memref<128x128xbf16, #tpu.memory_space<vmem>>, vector<128x128xbf16>
    %cst = arith.constant dense<0.000000e+00> : vector<64x128xf32>
    %6 = tpu.matmul %4, %5, %cst {dimension_numbers = #tpu.dot_dimension_numbers<[1], [0], [0], [1], [0, 0, 1, 1], [], []>} : vector<64x128xbf16>, vector<128x128xbf16>, vector<64x128xf32> -> vector<64x128xf32>
    %7 = arith.addf %3, %6 : vector<64x128xf32>
    %c0_6 = arith.constant 0 : index
    %c0_7 = arith.constant 0 : index
    %8 = vector.load %arg8[%c0_6, %c0_7] : memref<64x128xf32, #tpu.memory_space<vmem>>, vector<64x128xf32>
    tpu.vector_store %arg8[%c0_6, %c0_7], %7 {strides = array<i32>} : memref<64x128xf32, #tpu.memory_space<vmem>>, vector<64x128xf32>,
    %c0_i32_8 = arith.constant 0 : i32
    %9 = arith.cmpi eq, %arg2, %c0_i32_8 : i32
    %10 = arith.extui %9 : i1 to i32
    %c0_i32_9 = arith.constant 0 : i32
    %11 = arith.cmpi ne, %10, %c0_i32_9 : i32
    scf.if %11 {
      %c0_10 = arith.constant 0 : index
      %c0_11 = arith.constant 0 : index
      %12 = vector.load %arg8[%c0_10, %c0_11] : memref<64x128xf32, #tpu.memory_space<vmem>>, vector<64x128xf32>
      %c0_12 = arith.constant 0 : index
      %c0_13 = arith.constant 0 : index
      %13 = vector.load %arg5[%c0_12, %c0_13] : memref<1x128xf32, #tpu.memory_space<vmem>>, vector<1x128xf32>
      %14 = vector.broadcast %13 : vector<1x128xf32> to vector<64x128xf32>
      %15 = arith.addf %12, %14 : vector<64x128xf32>
      %c0_14 = arith.constant 0 : index
      %c0_15 = arith.constant 0 : index
      %16 = vector.load %arg6[%c0_14, %c0_15] : memref<64x128xbf16, #tpu.memory_space<vmem>>, vector<64x128xbf16>
      %17 = arith.extf %16 : vector<64x128xbf16> to vector<64x128xf32>
      %18 = arith.addf %15, %17 : vector<64x128xf32>
      %cst_16 = arith.constant 0.000000e+00 : f32
      %19 = vector.broadcast %cst_16 : f32 to vector<64x128xf32>
      %20 = arith.maximumf %18, %19 : vector<64x128xf32>
      %c0_17 = arith.constant 0 : index
      %c0_18 = arith.constant 0 : index
      %21 = vector.load %arg7[%c0_17, %c0_18] : memref<64x128xf32, #tpu.memory_space<vmem>>, vector<64x128xf32>
      tpu.vector_store %arg7[%c0_17, %c0_18], %20 {strides = array<i32>} : memref<64x128xf32, #tpu.memory_space<vmem>>, vector<64x128xf32>,
    } else {
    }
    return
  }
  func.func @transform_0(%arg0: i32, %arg1: i32, %arg2: i32) -> (i32, i32) {
    %c0_i32 = arith.constant 0 : i32
    return %arg0, %arg2 : i32, i32
  }
  func.func @transform_1(%arg0: i32, %arg1: i32, %arg2: i32) -> (i32, i32) {
    %c0_i32 = arith.constant 0 : i32
    return %arg2, %arg1 : i32, i32
  }
  func.func @transform_2(%arg0: i32, %arg1: i32, %arg2: i32) -> (i32, i32) {
    %c0_i32 = arith.constant 0 : i32
    %c0_i32_0 = arith.constant 0 : i32
    return %c0_i32, %arg1 : i32, i32
  }
  func.func @transform_3(%arg0: i32, %arg1: i32, %arg2: i32) -> (i32, i32) {
    %c0_i32 = arith.constant 0 : i32
    return %arg0, %arg1 : i32, i32
  }
  func.func @transform_4(%arg0: i32, %arg1: i32, %arg2: i32) -> (i32, i32) {
    %c0_i32 = arith.constant 0 : i32
    return %arg0, %arg1 : i32, i32
  }
}

</mosaic_0001>

<bundles_post_ra>
// kernel: basic_block_forward_nchw.3
= control target key start
LH: loop header
LB: loop body
LE: loop exit
PB: predicated region body
PF: predicated region fallthrough
CT: control target
= control target key end

     0   :  { %s839_s12 = smov 0   ;;  %s841_s13 = smov 0   ;;  %s912_s0 = inlined_call_operand.vmem [shape: bf16[128,128], index: 0, kind: input, shape index: {}]   ;;  %s913_s1 = inlined_call_operand.vmem [shape: bf16[128,128], index: 1, kind: input, shape index: {}]   ;;  %s914_s2 = inlined_call_operand.vmem [shape: f32[1,128], index: 2, kind: input, shape index: {}]   ;;  %s915_s3 = inlined_call_operand.vmem [shape: bf16[128,128], index: 3, kind: output, shape index: {}]  }
   0x1   :  { %s843_s14 = smov 0  }
   0x2 LB: > { %s32_s15 = sadd.s32 1, %s813_s13  ;;  %p648_p0 = scmp.ge.s32.totalorder %s817_s14, 1  ;;  %s817_s14 = sphi %s843_s14, %s13_s14   ;;  %s813_s13 = sphi %s841_s13, %s917_s13   ;;  %s809_s12 = sphi %s839_s12, %s916_s12  }
   0x3   : > { %p34_p1 = scmp.ge.s32.totalorder %s32_s15, 2  ;;  %p188_p2 = scmp.lt.s32.totalorder %s817_s14, 3 }
   0x5   : > { %s919_s15 = smov (%p34_p1, %s32_s15), 0  ;;  %p189_p3 = pnand %p648_p0, %p188_p2 }
   0x6   : > { %v783_v0 = vld [vmem:[%s913_s1] sm:$0xff] (!%p189_p3)   ;;  %s649_s18 = sshll.u32 (!%p189_p3), %s809_s12, 3  ;;  %v784_v1 = vld [vmem:[%s913_s1 + $0x8] sm:$0xff] (!%p189_p3)   ;;  %v785_v2 = vld [vmem:[%s913_s1 + $0x10] sm:$0xff] (!%p189_p3)  }
   0x7   : > { %192 = sbr.rel (%p189_p3) target bundleno = 261 (0x105), region = 32  ;;  %p230_p4 = scmp.lt.s32.totalorder (!%p189_p3), %s649_s18, 15  ;;  %719 = vmatprep.subr.bf16.mxu0 (!%p189_p3), %v783_v0  ;;  %743 = vmatprep.subr.bf16.mxu1 (!%p189_p3), %v783_v0  ;;  %v786_v3 = vld [vmem:[%s913_s1 + $0x18] sm:$0xff] (!%p189_p3)   ;;  %v787_v6 = vld [vmem:[%s913_s1 + $0x20] sm:$0xff] (!%p189_p3)   ;;  %v788_v7 = vld [vmem:[%s913_s1 + $0x28] sm:$0xff] (!%p189_p3)  }
   0x8   : > { %720 = vmatpush3.bf16.msra.mxu0 (!%p189_p3), %v783_v0  ;;  %751 = vmatpush3.bf16.msra.mxu1 (!%p189_p3), %v783_v0  ;;  %v789_v8 = vld [vmem:[%s913_s1 + $0x30] sm:$0xff] (!%p189_p3)   ;;  %v790_v9 = vld [vmem:[%s913_s1 + $0x38] sm:$0xff] (!%p189_p3)   ;;  %v665_v12 = vld [vmem:[%s914_s2] ss:$0 sm:$0xff] (!%p189_p3) }
   0x9   : > { %721 = vmatprep.subr.bf16.mxu0 (!%p189_p3), %v784_v1  ;;  %744 = vmatprep.subr.bf16.mxu1 (!%p189_p3), %v784_v1 }
   0xc   : > { %722 = vmatpush3.bf16.msra.mxu0 (!%p189_p3), %v784_v1  ;;  %752 = vmatpush3.bf16.msra.mxu1 (!%p189_p3), %v784_v1 }
   0xd   : > { %723 = vmatprep.subr.bf16.mxu0 (!%p189_p3), %v785_v2  ;;  %745 = vmatprep.subr.bf16.mxu1 (!%p189_p3), %v785_v2 }
   0xe   : > { %s921_s18 = smov (!%p230_p4, %s649_s18), 15 }
   0xf   : > { %s650_s23 = sshll.u32 %s921_s18, 2 }
  0x10   : > { %s874_s26 = scalar_lea.vmem %s912_s0, %s650_s23  ;;  %724 = vmatpush3.bf16.msra.mxu0 %v785_v2  ;;  %753 = vmatpush3.bf16.msra.mxu1 %v785_v2  ;;  %s257_s17 = scalar_lea.vmem %s915_s3, %s650_s23 }
  0x11   : > { %v791_v4 = vld [vmem:[%s874_s26] sm:$0xff]   ;;  %v792_v5 = vld [vmem:[%s874_s26 + $0x10] sm:$0xff]   ;;  %725 = vmatprep.subr.bf16.mxu0 %v786_v3  ;;  %746 = vmatprep.subr.bf16.mxu1 %v786_v3  ;;  %v793_v10 = vld [vmem:[%s874_s26 + $0x8] sm:$0xff]  }
  0x12   : > { %735 = vmatprep.mubr.bf16.mxu0 %v791_v4  ;;  %739 = vmatprep.mubr.bf16.mxu1 %v792_v5  ;;  %v794_v11 = vld [vmem:[%s874_s26 + $0x18] sm:$0xff]  }
  0x14   : > { %726 = vmatpush3.bf16.msra.mxu0 %v786_v3  ;;  %754 = vmatpush3.bf16.msra.mxu1 %v786_v3 }
  0x15   : > { %727 = vmatprep.subr.bf16.mxu0 %v787_v6  ;;  %747 = vmatprep.subr.bf16.mxu1 %v787_v6 }
  0x18   : > { %728 = vmatpush3.bf16.msra.mxu0 %v787_v6  ;;  %755 = vmatpush3.bf16.msra.mxu1 %v787_v6 }
  0x19   : > { %729 = vmatprep.subr.bf16.mxu0 %v788_v7  ;;  %748 = vmatprep.subr.bf16.mxu1 %v788_v7 }
  0x1c   : > { %730 = vmatpush3.bf16.msra.mxu0 %v788_v7  ;;  %756 = vmatpush3.bf16.msra.mxu1 %v788_v7 }
  0x1d   : > { %731 = vmatprep.subr.bf16.mxu0 %v789_v8  ;;  %749 = vmatprep.subr.bf16.mxu1 %v789_v8 }
  0x20   : > { %732 = vmatpush3.bf16.msra.mxu0 %v789_v8  ;;  %757 = vmatpush3.bf16.msra.mxu1 %v789_v8 }
  0x21   : > { %733 = vmatprep.subr.bf16.mxu0 %v790_v9  ;;  %750 = vmatprep.subr.bf16.mxu1 %v790_v9 }
  0x24   : > { %734 = vmatpush3.bf16.msra.mxu0 %v790_v9  ;;  %758 = vmatpush3.bf16.msra.mxu1 %v790_v9 }
  0x27   : > { %736 = vmatmul.mubr.bf16.vlgmr.msra.gmra.mrb[0].mxu0 %v793_v10  ;;  %740 = vmatmul.mubr.bf16.vlgmr.msra.gmra.mrb[0].mxu1 %v794_v11 }
  0xfa   : > { %v737_v13 = vpop.f32.mrb[0].mxu0  ;;  %v741_v14 = vpop.f32.mrb[0].mxu1 }
  0xfb   : > { %v477_v15 = vadd.f32 %v737_v13, %v665_v12  ;;  %v481_v16 = vadd.f32 %v741_v14, %v665_v12  ;;  %v410_v17 = vpop.f32.mrb[1].mxu0  ;;  %v426_v18 = vpop.f32.mrb[1].mxu1 }
  0xfc   : > { %v475_v19 = vadd.f32 %v665_v12, %v410_v17  ;;  %v479_v20 = vadd.f32 %v665_v12, %v426_v18  ;;  %v738_v21 = vpop.f32.mrb[2].mxu0  ;;  %v742_v22 = vpop.f32.mrb[2].mxu1 }
  0xfd   : > { %v478_v23 = vadd.f32 %v738_v21, %v665_v12  ;;  %v482_v24 = vadd.f32 %v742_v22, %v665_v12  ;;  %v413_v25 = vpop.f32.mrb[3].mxu0  ;;  %v429_v26 = vpop.f32.mrb[3].mxu1  ;;  %v485_v29 = vmax.f32 %v477_v15, 0.0  ;;  %v489_v30 = vmax.f32 %v481_v16, 0.0 }
  0xfe   : > { %v476_v27 = vadd.f32 %v665_v12, %v413_v25  ;;  %v480_v28 = vadd.f32 %v665_v12, %v429_v26  ;;  %v483_v33 = vmax.f32 %v475_v19, 0.0  ;;  %v487_v34 = vmax.f32 %v479_v20, 0.0 }
  0xff   : > { %v486_v31 = vmax.f32 %v478_v23, 0.0  ;;  %v490_v32 = vmax.f32 %v482_v24, 0.0 }
 0x100   : > { %v484_v35 = vmax.f32 %v476_v27, 0.0  ;;  %v488_v36 = vmax.f32 %v480_v28, 0.0 }
 0x101   : > { %v692_v37 = vpack.c.bf16 %v486_v31, %v485_v29  ;;  %v702_v38 = vpack.c.bf16 %v490_v32, %v489_v30 }
 0x102   : > { %v687_v39 = vpack.c.bf16 %v484_v35, %v483_v33  ;;  %v697_v40 = vpack.c.bf16 %v488_v36, %v487_v34 }
 0x103   : > { %704 = vst [vmem:[%s257_s17 + $0x8] sm:$0xff] %v692_v37   ;;  %706 = vst [vmem:[%s257_s17 + $0x18] sm:$0xff] %v702_v38  }
 0x104   : > { %688 = vst [vmem:[%s257_s17] sm:$0xff] %v687_v39   ;;  %705 = vst [vmem:[%s257_s17 + $0x10] sm:$0xff] %v697_v40  }
 0x105 PF: > { %s13_s14 = sadd.s32 1, %s817_s14   ;;  %s916_s12 = smov %s813_s13 }
 0x106   : > { %p10_p5 = scmp.ge.s32.totalorder %s13_s14, 4   ;;  %s917_s13 = smov %s919_s15 }
 0x108   :  { %12 = sbr.rel (!%p10_p5) target bundleno = 2 (0x2), region = 76 }

// kernel: basic_block_forward_nchw.4
= control target key start
LH: loop header
LB: loop body
LE: loop exit
PB: predicated region body
PF: predicated region fallthrough
CT: control target
= control target key end

     0   :  { %s831_s12 = smov 0   ;;  %s833_s13 = smov 0   ;;  %s904_s0 = inlined_call_operand.vmem [shape: bf16[128,128], index: 0, kind: input, shape index: {}]   ;;  %s905_s1 = inlined_call_operand.vmem [shape: bf16[128,128], index: 1, kind: input, shape index: {}]   ;;  %s906_s2 = inlined_call_operand.vmem [shape: f32[1,128], index: 2, kind: input, shape index: {}]   ;;  %s907_s3 = inlined_call_operand.vmem [shape: bf16[128,128], index: 3, kind: output, shape index: {}]  }
   0x1   :  { %s835_s14 = smov 0  }
   0x2 LB: > { %s32_s15 = sadd.s32 1, %s805_s13  ;;  %p640_p0 = scmp.ge.s32.totalorder %s809_s14, 1  ;;  %s809_s14 = sphi %s835_s14, %s13_s14   ;;  %s805_s13 = sphi %s833_s13, %s909_s13   ;;  %s801_s12 = sphi %s831_s12, %s908_s12  }
   0x3   : > { %p34_p1 = scmp.ge.s32.totalorder %s32_s15, 2  ;;  %p188_p2 = scmp.lt.s32.totalorder %s809_s14, 3 }
   0x5   : > { %s911_s15 = smov (%p34_p1, %s32_s15), 0  ;;  %p189_p3 = pnand %p640_p0, %p188_p2 }
   0x6   : > { %v775_v0 = vld [vmem:[%s905_s1] sm:$0xff] (!%p189_p3)   ;;  %s641_s18 = sshll.u32 (!%p189_p3), %s801_s12, 3  ;;  %v776_v1 = vld [vmem:[%s905_s1 + $0x8] sm:$0xff] (!%p189_p3)   ;;  %v777_v2 = vld [vmem:[%s905_s1 + $0x10] sm:$0xff] (!%p189_p3)  }
   0x7   : > { %192 = sbr.rel (%p189_p3) target bundleno = 259 (0x103), region = 32  ;;  %p230_p4 = scmp.lt.s32.totalorder (!%p189_p3), %s641_s18, 15  ;;  %711 = vmatprep.subr.bf16.mxu0 (!%p189_p3), %v775_v0  ;;  %735 = vmatprep.subr.bf16.mxu1 (!%p189_p3), %v775_v0  ;;  %v778_v3 = vld [vmem:[%s905_s1 + $0x18] sm:$0xff] (!%p189_p3)   ;;  %v779_v6 = vld [vmem:[%s905_s1 + $0x20] sm:$0xff] (!%p189_p3)   ;;  %v780_v7 = vld [vmem:[%s905_s1 + $0x28] sm:$0xff] (!%p189_p3)  }
   0x8   : > { %712 = vmatpush3.bf16.msra.mxu0 (!%p189_p3), %v775_v0  ;;  %743 = vmatpush3.bf16.msra.mxu1 (!%p189_p3), %v775_v0  ;;  %v781_v8 = vld [vmem:[%s905_s1 + $0x30] sm:$0xff] (!%p189_p3)   ;;  %v782_v9 = vld [vmem:[%s905_s1 + $0x38] sm:$0xff] (!%p189_p3)   ;;  %v657_v13 = vld [vmem:[%s906_s2] ss:$0 sm:$0xff] (!%p189_p3) }
   0x9   : > { %713 = vmatprep.subr.bf16.mxu0 (!%p189_p3), %v776_v1  ;;  %736 = vmatprep.subr.bf16.mxu1 (!%p189_p3), %v776_v1 }
   0xc   : > { %714 = vmatpush3.bf16.msra.mxu0 (!%p189_p3), %v776_v1  ;;  %744 = vmatpush3.bf16.msra.mxu1 (!%p189_p3), %v776_v1 }
   0xd   : > { %715 = vmatprep.subr.bf16.mxu0 (!%p189_p3), %v777_v2  ;;  %737 = vmatprep.subr.bf16.mxu1 (!%p189_p3), %v777_v2 }
   0xe   : > { %s913_s18 = smov (!%p230_p4, %s641_s18), 15 }
   0xf   : > { %s642_s23 = sshll.u32 %s913_s18, 2 }
  0x10   : > { %s866_s26 = scalar_lea.vmem %s904_s0, %s642_s23  ;;  %716 = vmatpush3.bf16.msra.mxu0 %v777_v2  ;;  %745 = vmatpush3.bf16.msra.mxu1 %v777_v2  ;;  %s257_s17 = scalar_lea.vmem %s907_s3, %s642_s23 }
  0x11   : > { %v783_v4 = vld [vmem:[%s866_s26] sm:$0xff]   ;;  %v784_v5 = vld [vmem:[%s866_s26 + $0x10] sm:$0xff]   ;;  %717 = vmatprep.subr.bf16.mxu0 %v778_v3  ;;  %738 = vmatprep.subr.bf16.mxu1 %v778_v3  ;;  %v785_v10 = vld [vmem:[%s866_s26 + $0x8] sm:$0xff]  }
  0x12   : > { %727 = vmatprep.mubr.bf16.mxu0 %v783_v4  ;;  %731 = vmatprep.mubr.bf16.mxu1 %v784_v5  ;;  %v786_v11 = vld [vmem:[%s866_s26 + $0x18] sm:$0xff]  }
  0x14   : > { %718 = vmatpush3.bf16.msra.mxu0 %v778_v3  ;;  %746 = vmatpush3.bf16.msra.mxu1 %v778_v3 }
  0x15   : > { %719 = vmatprep.subr.bf16.mxu0 %v779_v6  ;;  %739 = vmatprep.subr.bf16.mxu1 %v779_v6 }
  0x18   : > { %720 = vmatpush3.bf16.msra.mxu0 %v779_v6  ;;  %747 = vmatpush3.bf16.msra.mxu1 %v779_v6 }
  0x19   : > { %721 = vmatprep.subr.bf16.mxu0 %v780_v7  ;;  %740 = vmatprep.subr.bf16.mxu1 %v780_v7 }
  0x1c   : > { %722 = vmatpush3.bf16.msra.mxu0 %v780_v7  ;;  %748 = vmatpush3.bf16.msra.mxu1 %v780_v7 }
  0x1d   : > { %723 = vmatprep.subr.bf16.mxu0 %v781_v8  ;;  %741 = vmatprep.subr.bf16.mxu1 %v781_v8 }
  0x20   : > { %724 = vmatpush3.bf16.msra.mxu0 %v781_v8  ;;  %749 = vmatpush3.bf16.msra.mxu1 %v781_v8 }
  0x21   : > { %725 = vmatprep.subr.bf16.mxu0 %v782_v9  ;;  %742 = vmatprep.subr.bf16.mxu1 %v782_v9 }
  0x24   : > { %726 = vmatpush3.bf16.msra.mxu0 %v782_v9  ;;  %750 = vmatpush3.bf16.msra.mxu1 %v782_v9 }
  0x27   : > { %728 = vmatmul.mubr.bf16.vlgmr.msra.gmra.mrb[0].mxu0 %v785_v10  ;;  %732 = vmatmul.mubr.bf16.vlgmr.msra.gmra.mrb[0].mxu1 %v786_v11 }
  0xfa   : > { %v729_v12 = vpop.f32.mrb[0].mxu0  ;;  %v733_v14 = vpop.f32.mrb[0].mxu1 }
  0xfb   : > { %v410_v15 = vpop.f32.mrb[1].mxu0  ;;  %v426_v16 = vpop.f32.mrb[1].mxu1  ;;  %v477_v19 = vadd.f32 %v729_v12, %v657_v13  ;;  %v481_v20 = vadd.f32 %v733_v14, %v657_v13 }
  0xfc   : > { %v730_v17 = vpop.f32.mrb[2].mxu0  ;;  %v734_v18 = vpop.f32.mrb[2].mxu1  ;;  %v475_v25 = vadd.f32 %v657_v13, %v410_v15  ;;  %v479_v26 = vadd.f32 %v657_v13, %v426_v16 }
  0xfd   : > { %v478_v21 = vadd.f32 %v730_v17, %v657_v13  ;;  %v482_v22 = vadd.f32 %v734_v18, %v657_v13  ;;  %v413_v23 = vpop.f32.mrb[3].mxu0  ;;  %v429_v24 = vpop.f32.mrb[3].mxu1 }
  0xfe   : > { %v476_v27 = vadd.f32 %v657_v13, %v413_v23  ;;  %v480_v28 = vadd.f32 %v657_v13, %v429_v24 }
  0xff   : > { %v684_v29 = vpack.c.bf16 %v478_v21, %v477_v19  ;;  %v694_v30 = vpack.c.bf16 %v482_v22, %v481_v20 }
 0x100   : > { %v679_v31 = vpack.c.bf16 %v476_v27, %v475_v25  ;;  %v689_v32 = vpack.c.bf16 %v480_v28, %v479_v26 }
 0x101   : > { %696 = vst [vmem:[%s257_s17 + $0x8] sm:$0xff] %v684_v29   ;;  %698 = vst [vmem:[%s257_s17 + $0x18] sm:$0xff] %v694_v30  }
 0x102   : > { %680 = vst [vmem:[%s257_s17] sm:$0xff] %v679_v31   ;;  %697 = vst [vmem:[%s257_s17 + $0x10] sm:$0xff] %v689_v32  }
 0x103 PF: > { %s13_s14 = sadd.s32 1, %s809_s14   ;;  %s908_s12 = smov %s805_s13 }
 0x104   : > { %p10_p5 = scmp.ge.s32.totalorder %s13_s14, 4   ;;  %s909_s13 = smov %s911_s15 }
 0x106   :  { %12 = sbr.rel (!%p10_p5) target bundleno = 2 (0x2), region = 76 }

// kernel: basic_block_forward_nchw.5
= control target key start
LH: loop header
LB: loop body
LE: loop exit
PB: predicated region body
PF: predicated region fallthrough
CT: control target
= control target key end

     0   :  { %s893_s15 = smov 0   ;;  %s895_s16 = smov 0   ;;  %s970_s0 = inlined_call_operand.vmem [shape: bf16[128,128], index: 0, kind: input, shape index: {}]   ;;  %s971_s1 = inlined_call_operand.vmem [shape: bf16[128,128], index: 1, kind: input, shape index: {}]   ;;  %s972_s2 = inlined_call_operand.vmem [shape: f32[1,128], index: 2, kind: input, shape index: {}]   ;;  %s973_s3 = inlined_call_operand.vmem [shape: bf16[128,128], index: 3, kind: input, shape index: {}]   ;;  %s974_s4 = inlined_call_operand.vmem [shape: f32[128,128], index: 4, kind: output, shape index: {}]  }
   0x1   :  { %s897_s17 = smov 0  }
   0x2 LB: > { %s33_s18 = sadd.s32 1, %s862_s16  ;;  %p715_p0 = scmp.ge.s32.totalorder %s866_s17, 1  ;;  %s866_s17 = sphi %s897_s17, %s14_s17   ;;  %s862_s16 = sphi %s895_s16, %s976_s16   ;;  %s858_s15 = sphi %s893_s15, %s975_s15  }
   0x3   : > { %p35_p1 = scmp.ge.s32.totalorder %s33_s18, 2  ;;  %p229_p2 = scmp.lt.s32.totalorder %s866_s17, 3 }
   0x5   : > { %s978_s18 = smov (%p35_p1, %s33_s18), 0  ;;  %p230_p3 = pnand %p715_p0, %p229_p2 }
   0x6   : > { %v832_v0 = vld [vmem:[%s971_s1] sm:$0xff] (!%p230_p3)   ;;  %s716_s21 = sshll.u32 (!%p230_p3), %s858_s15, 3  ;;  %v833_v1 = vld [vmem:[%s971_s1 + $0x8] sm:$0xff] (!%p230_p3)   ;;  %v834_v2 = vld [vmem:[%s971_s1 + $0x10] sm:$0xff] (!%p230_p3)  }
   0x7   : > { %233 = sbr.rel (%p230_p3) target bundleno = 261 (0x105), region = 36  ;;  %p281_p4 = scmp.lt.s32.totalorder (!%p230_p3), %s716_s21, 15  ;;  %768 = vmatprep.subr.bf16.mxu0 (!%p230_p3), %v832_v0  ;;  %792 = vmatprep.subr.bf16.mxu1 (!%p230_p3), %v832_v0  ;;  %v835_v3 = vld [vmem:[%s971_s1 + $0x18] sm:$0xff] (!%p230_p3)   ;;  %v836_v6 = vld [vmem:[%s971_s1 + $0x20] sm:$0xff] (!%p230_p3)   ;;  %v837_v7 = vld [vmem:[%s971_s1 + $0x28] sm:$0xff] (!%p230_p3)  }
   0x8   : > { %769 = vmatpush3.bf16.msra.mxu0 (!%p230_p3), %v832_v0  ;;  %800 = vmatpush3.bf16.msra.mxu1 (!%p230_p3), %v832_v0  ;;  %v838_v8 = vld [vmem:[%s971_s1 + $0x30] sm:$0xff] (!%p230_p3)   ;;  %v839_v9 = vld [vmem:[%s971_s1 + $0x38] sm:$0xff] (!%p230_p3)   ;;  %v734_v16 = vld [vmem:[%s972_s2] ss:$0 sm:$0xff] (!%p230_p3) }
   0x9   : > { %770 = vmatprep.subr.bf16.mxu0 (!%p230_p3), %v833_v1  ;;  %793 = vmatprep.subr.bf16.mxu1 (!%p230_p3), %v833_v1 }
   0xc   : > { %771 = vmatpush3.bf16.msra.mxu0 (!%p230_p3), %v833_v1  ;;  %801 = vmatpush3.bf16.msra.mxu1 (!%p230_p3), %v833_v1 }
   0xd   : > { %772 = vmatprep.subr.bf16.mxu0 (!%p230_p3), %v834_v2  ;;  %794 = vmatprep.subr.bf16.mxu1 (!%p230_p3), %v834_v2 }
   0xe   : > { %s980_s21 = smov (!%p281_p4, %s716_s21), 15 }
   0xf   : > { %s717_s26 = sshll.u32 %s980_s21, 2  ;;  %s721_s23 = sshll.u32 %s980_s21, 3 }
  0x10   : > { %s928_s29 = scalar_lea.vmem %s970_s0, %s717_s26  ;;  %773 = vmatpush3.bf16.msra.mxu0 %v834_v2  ;;  %802 = vmatpush3.bf16.msra.mxu1 %v834_v2  ;;  %s308_s19 = scalar_lea.vmem %s973_s3, %s717_s26 }
  0x11   : > { %v840_v4 = vld [vmem:[%s928_s29] sm:$0xff]   ;;  %v841_v5 = vld [vmem:[%s928_s29 + $0x10] sm:$0xff]   ;;  %774 = vmatprep.subr.bf16.mxu0 %v835_v3  ;;  %795 = vmatprep.subr.bf16.mxu1 %v835_v3  ;;  %v842_v10 = vld [vmem:[%s928_s29 + $0x8] sm:$0xff]   ;;  %s317_s25 = scalar_lea.vmem %s974_s4, %s721_s23 }
  0x12   : > { %784 = vmatprep.mubr.bf16.mxu0 %v840_v4  ;;  %788 = vmatprep.mubr.bf16.mxu1 %v841_v5  ;;  %v843_v11 = vld [vmem:[%s928_s29 + $0x18] sm:$0xff]   ;;  %v753_v12 = vld [vmem:[%s308_s19 + $0x8] sm:$0xff]   ;;  %v738_v14 = vld [vmem:[%s308_s19] sm:$0xff]  }
  0x13   : > { %v755_v13 = vld [vmem:[%s308_s19 + $0x18] sm:$0xff]   ;;  %v754_v15 = vld [vmem:[%s308_s19 + $0x10] sm:$0xff]   ;;  %v743_v17 = vunpack.c.l.bf16 %v753_v12  ;;  %v739_v21 = vunpack.c.l.bf16 %v738_v14  ;;  %v744_v27 = vunpack.c.h.bf16 %v753_v12  ;;  %v740_v33 = vunpack.c.h.bf16 %v738_v14 }
  0x14   : > { %775 = vmatpush3.bf16.msra.mxu0 %v835_v3  ;;  %803 = vmatpush3.bf16.msra.mxu1 %v835_v3  ;;  %v751_v18 = vunpack.c.l.bf16 %v755_v13  ;;  %v747_v22 = vunpack.c.l.bf16 %v754_v15  ;;  %v752_v28 = vunpack.c.h.bf16 %v755_v13  ;;  %v748_v34 = vunpack.c.h.bf16 %v754_v15 }
  0x15   : > { %776 = vmatprep.subr.bf16.mxu0 %v836_v6  ;;  %796 = vmatprep.subr.bf16.mxu1 %v836_v6 }
  0x18   : > { %777 = vmatpush3.bf16.msra.mxu0 %v836_v6  ;;  %804 = vmatpush3.bf16.msra.mxu1 %v836_v6 }
  0x19   : > { %778 = vmatprep.subr.bf16.mxu0 %v837_v7  ;;  %797 = vmatprep.subr.bf16.mxu1 %v837_v7 }
  0x1c   : > { %779 = vmatpush3.bf16.msra.mxu0 %v837_v7  ;;  %805 = vmatpush3.bf16.msra.mxu1 %v837_v7 }
  0x1d   : > { %780 = vmatprep.subr.bf16.mxu0 %v838_v8  ;;  %798 = vmatprep.subr.bf16.mxu1 %v838_v8 }
  0x20   : > { %781 = vmatpush3.bf16.msra.mxu0 %v838_v8  ;;  %806 = vmatpush3.bf16.msra.mxu1 %v838_v8 }
  0x21   : > { %782 = vmatprep.subr.bf16.mxu0 %v839_v9  ;;  %799 = vmatprep.subr.bf16.mxu1 %v839_v9 }
  0x24   : > { %783 = vmatpush3.bf16.msra.mxu0 %v839_v9  ;;  %807 = vmatpush3.bf16.msra.mxu1 %v839_v9 }
  0x27   : > { %785 = vmatmul.mubr.bf16.vlgmr.msra.gmra.mrb[0].mxu0 %v842_v10  ;;  %789 = vmatmul.mubr.bf16.vlgmr.msra.gmra.mrb[0].mxu1 %v843_v11 }
  0xfa   : > { %v786_v19 = vpop.f32.mrb[0].mxu0  ;;  %v790_v20 = vpop.f32.mrb[0].mxu1 }
  0xfb   : > { %v537_v23 = vadd.f32 %v786_v19, %v734_v16  ;;  %v541_v24 = vadd.f32 %v790_v20, %v734_v16  ;;  %v470_v25 = vpop.f32.mrb[1].mxu0  ;;  %v486_v26 = vpop.f32.mrb[1].mxu1 }
  0xfc   : > { %v535_v29 = vadd.f32 %v734_v16, %v470_v25  ;;  %v539_v30 = vadd.f32 %v734_v16, %v486_v26  ;;  %v787_v31 = vpop.f32.mrb[2].mxu0  ;;  %v791_v32 = vpop.f32.mrb[2].mxu1 }
  0xfd   : > { %v561_v35 = vadd.f32 %v743_v17, %v537_v23  ;;  %v565_v36 = vadd.f32 %v751_v18, %v541_v24  ;;  %v538_v37 = vadd.f32 %v787_v31, %v734_v16  ;;  %v542_v38 = vadd.f32 %v791_v32, %v734_v16  ;;  %v473_v39 = vpop.f32.mrb[3].mxu0  ;;  %v489_v40 = vpop.f32.mrb[3].mxu1 }
  0xfe   : > { %v559_v41 = vadd.f32 %v739_v21, %v535_v29  ;;  %v563_v42 = vadd.f32 %v747_v22, %v539_v30  ;;  %v536_v43 = vadd.f32 %v734_v16, %v473_v39  ;;  %v540_v44 = vadd.f32 %v734_v16, %v489_v40 }
  0xff   : > { %v569_v45 = vmax.f32 %v561_v35, 0.0  ;;  %v573_v46 = vmax.f32 %v565_v36, 0.0  ;;  %v562_v47 = vadd.f32 %v744_v27, %v538_v37  ;;  %v566_v48 = vadd.f32 %v752_v28, %v542_v38 }
 0x100   : > { %v567_v49 = vmax.f32 %v559_v41, 0.0  ;;  %v571_v50 = vmax.f32 %v563_v42, 0.0  ;;  %v560_v51 = vadd.f32 %v740_v33, %v536_v43  ;;  %v564_v52 = vadd.f32 %v748_v34, %v540_v44 }
 0x101   : > { %577 = vst [vmem:[%s317_s25 + $0x10] sm:$0xff] %v569_v45  ;;  %581 = vst [vmem:[%s317_s25 + $0x30] sm:$0xff] %v573_v46  ;;  %v570_v53 = vmax.f32 %v562_v47, 0.0  ;;  %v574_v54 = vmax.f32 %v566_v48, 0.0 }
 0x102   : > { %575 = vst [vmem:[%s317_s25] sm:$0xff] %v567_v49  ;;  %579 = vst [vmem:[%s317_s25 + $0x20] sm:$0xff] %v571_v50  ;;  %v568_v55 = vmax.f32 %v560_v51, 0.0  ;;  %v572_v56 = vmax.f32 %v564_v52, 0.0 }
 0x103   : > { %578 = vst [vmem:[%s317_s25 + $0x18] sm:$0xff] %v570_v53  ;;  %582 = vst [vmem:[%s317_s25 + $0x38] sm:$0xff] %v574_v54 }
 0x104   : > { %576 = vst [vmem:[%s317_s25 + $0x8] sm:$0xff] %v568_v55  ;;  %580 = vst [vmem:[%s317_s25 + $0x28] sm:$0xff] %v572_v56 }
 0x105 PF: > { %s14_s17 = sadd.s32 1, %s866_s17   ;;  %s975_s15 = smov %s862_s16 }
 0x106   : > { %p11_p5 = scmp.ge.s32.totalorder %s14_s17, 4   ;;  %s976_s16 = smov %s978_s18 }
 0x108   :  { %13 = sbr.rel (!%p11_p5) target bundleno = 2 (0x2), region = 83 }

</bundles_post_ra>
